<compile_context>
chip_gen: v5e
topology: v5e:2x2
jax: 0.10.0
libtpu: 0.0.40
codegen_flags: <defaults>
</compile_context>

<pallas_src>
import jax
import jax.numpy as jnp
from jax.experimental import pallas as pl
from jax.experimental.pallas import tpu as pltpu


def _make_decoder_kernel(n_layers: int):
    """Fused MLP kernel over batch-on-lanes activations.

    Ref order: x tile (feat, tb) bf16, then per layer W_i (d_out, d_in) bf16 and
    b_i (d_out, 1) f32, then the output tile (out_dim, tb) f32.
    Computes h <- relu(W @ h + b) per layer; batch stays on the lane axis.
    """

    def kernel(*refs):
        x_ref = refs[0]
        o_ref = refs[-1]
        params = refs[1:-1]

        h = x_ref[...]  # bf16 (d_in, tb)
        for i in range(n_layers):
            w = params[2 * i][...]        # bf16 (d_out, d_in), BN folded in
            b = params[2 * i + 1][...]    # f32  (d_out, 1),    BN folded in
            # MXU: bf16 x bf16 -> fp32 accumulate; output (d_out, tb), lane-dense.
            acc = jnp.dot(w, h, preferred_element_type=jnp.float32)
            # fp32 VPU epilogue: bias (broadcast over lanes) + ReLU.
            acc = jnp.maximum(acc + b, 0.0)
            # Single dtype convert per layer; final layer stays fp32 for the store.
            h = acc.astype(jnp.bfloat16) if i < n_layers - 1 else acc
        o_ref[...] = h.astype(o_ref.dtype)

    return kernel


def auto_decoder_forward(x, kernel_params, *, tb=None):
    """Run the fused decoder kernel.

    Args:
      x: (B, feature_dim) encoded features, ideally bf16 (cast at the producer).
        B must be a multiple of the batch tile.
      kernel_params: flat list [W1, b1, ..., Wn, bn] with W_i bf16 of shape
        (d_out, d_in) (native PyTorch layout, BN folded) and b_i f32 (d_out, 1).
      tb: batch tile (lane width per grid step), multiple of 128. Default: two
        parallel steps when B >= 256 (fills both v7x TensorCores), else one step.

    Returns:
      (B, input_dim) float32 reconstruction.
    """
    n_layers = len(kernel_params) // 2
    B, feat = x.shape
    out_dim = kernel_params[-2].shape[0]

    if tb is None:
        tb = (B // 2) // 128 * 128 if B >= 256 else B
        tb = max(tb, min(B, 128))
    assert B % tb == 0, "batch must be divisible by the batch tile"

    # Layout plumbing (wrapper-side, not compute): put the batch on the lane axis.
    x_t = x.T  # (feat, B)

    kernel = _make_decoder_kernel(n_layers)

    # Advisory cost estimate so XLA can overlap this sub-microsecond kernel.
    flops = 0
    d_in = feat
    for i in range(n_layers):
        d_out = kernel_params[2 * i].shape[0]
        flops += 2 * B * d_in * d_out
        d_in = d_out
    bytes_accessed = (
        x_t.size * x_t.dtype.itemsize
        + B * out_dim * 4
        + sum(int(p.size) * p.dtype.itemsize for p in kernel_params)
    )
    cost = pl.CostEstimate(flops=flops, transcendentals=0,
                           bytes_accessed=bytes_accessed)

    # Activation tiles move with the grid along the lane (batch) axis; params stay
    # resident (constant block index (0, 0) for every step).
    x_spec = pl.BlockSpec((feat, tb), lambda i: (0, i))
    out_spec = pl.BlockSpec((out_dim, tb), lambda i: (0, i))

    def _param_specs(single_buffer: bool):
        if single_buffer:
            # Resident params never change block -> no need for double buffering.
            return [pl.BlockSpec(p.shape, lambda i: (0, 0),
                                 pipeline_mode=pl.Buffered(1))
                    for p in kernel_params]
        return [pl.BlockSpec(p.shape, lambda i: (0, 0)) for p in kernel_params]

    def _run(single_buffer: bool):
        out_t = pl.pallas_call(
            kernel,
            out_shape=jax.ShapeDtypeStruct((out_dim, B), jnp.float32),
            grid=(B // tb,),
            in_specs=[x_spec] + _param_specs(single_buffer),
            out_specs=out_spec,
            compiler_params=pltpu.CompilerParams(
                dimension_semantics=("parallel",)),
            cost_estimate=cost,
        )(x_t, *kernel_params)
        return jax.block_until_ready(out_t)

    try:
        out_t = _run(True)
    except Exception:
        # Older/stricter jax may reject pipeline_mode on pallas_call BlockSpecs;
        # fall back to default double-buffering (params are tiny, ~26 KB).
        out_t = _run(False)

    return out_t.T  # back to (B, out_dim)


def init_auto_decoder_params(key, input_dim, feature_dim, dims):
    """Deterministic parameter init mirroring AutoDecoder.__init__ shapes, with
    eval-mode BatchNorm folded into the Linear weights/bias.

    Decoder maps feature_dim -> reversed(dims)... -> input_dim. Returns a flat
    fp32 list [W1, b1, ..., Wn, bn] with W_i (d_out, d_in) (native PyTorch layout)
    and b_i (d_out, 1).
    """
    layer_dims = [feature_dim] + list(reversed(dims)) + [input_dim]
    params = []
    eps = 1e-5
    for i in range(len(layer_dims) - 1):
        d_in, d_out = layer_dims[i], layer_dims[i + 1]
        key, kw, kb, kg, kbeta = jax.random.split(key, 5)
        bound = 1.0 / jnp.sqrt(d_in)
        w = jax.random.uniform(kw, (d_out, d_in), jnp.float32, -bound, bound)
        b = jax.random.uniform(kb, (d_out, 1), jnp.float32, -bound, bound)
        if i < len(layer_dims) - 2:
            # BatchNorm1d affine (deterministic, non-trivial); running stats at
            # PyTorch init: mean=0, var=1.  y = (W x + b) * s + t  folded in.
            gamma = 1.0 + 0.1 * jax.random.normal(kg, (d_out, 1), jnp.float32)
            beta = 0.1 * jax.random.normal(kbeta, (d_out, 1), jnp.float32)
            running_mean = jnp.zeros((d_out, 1), jnp.float32)
            running_var = jnp.ones((d_out, 1), jnp.float32)
            scale = gamma / jnp.sqrt(running_var + eps)
            shift = beta - running_mean * scale
            w = w * scale          # per-output-row scale
            b = b * scale + shift
        params += [w, b]
    return params


def prepare_kernel_params(params_f32):
    """Cast matmul weights to bf16 (native MXU fast path, halves param bytes);
    keep biases fp32 for the VPU epilogue."""
    out = []
    for i in range(len(params_f32) // 2):
        out.append(params_f32[2 * i].astype(jnp.bfloat16))
        out.append(params_f32[2 * i + 1])
    return out


if __name__ == "__main__":
    # Shapes consistent with the module:
    #   AutoDecoder(input_dim=16, feature_dim=32, dims=[64, 128])
    #   decoder: 32 -> 128 -> 64 -> 16
    input_dim, feature_dim, dims = 16, 32, [64, 128]
    batch = 256  # default tb -> 128 lanes x 2 parallel grid steps

    key = jax.random.PRNGKey(0)
    key, kx = jax.random.split(key)
    x_f32 = jax.random.normal(kx, (batch, feature_dim), jnp.float32)
    x = x_f32.astype(jnp.bfloat16)  # producer-side cast: halves activation HBM traffic

    params_f32 = init_auto_decoder_params(key, input_dim, feature_dim, dims)
    kernel_params = prepare_kernel_params(params_f32)

    out = auto_decoder_forward(x, kernel_params)
    out = jax.block_until_ready(out)
    assert out.shape == (batch, input_dim)
    assert out.dtype == jnp.float32

    # 1) Reference mimicking the kernel numerics (bf16 operands/intermediates,
    #    fp32 accumulation).
    def ref_kernel_numerics(x_bf16, kparams):
        n = len(kparams) // 2
        h = x_bf16.T  # (feat, B) bf16
        for i in range(n):
            w = kparams[2 * i].astype(jnp.float32)
            b = kparams[2 * i + 1]
            acc = jnp.dot(w, h.astype(jnp.float32),
                          precision=jax.lax.Precision.HIGHEST) + b
            acc = jnp.maximum(acc, 0.0)
            h = acc.astype(jnp.bfloat16) if i < n - 1 else acc
        return h.T

    ref_bf16 = ref_kernel_numerics(x, kernel_params)
    assert jnp.allclose(out, ref_bf16, atol=1e-2, rtol=1e-2)

    # 2) Loose sanity check against full-fp32 eval-mode module semantics (folded BN).
    def ref_fp32(xf, params):
        h = xf
        for i in range(len(params) // 2):
            w = params[2 * i]           # (d_out, d_in)
            b = params[2 * i + 1][:, 0]
            h = jnp.maximum(
                jnp.dot(h, w.T, precision=jax.lax.Precision.HIGHEST) + b, 0.0)
        return h

    ref32 = ref_fp32(x_f32, params_f32)
    assert jnp.allclose(out, ref32, atol=1e-1, rtol=1e-1)

    print("KERNEL_OK")
</pallas_src>

<mosaic_0001>
module attributes {stable_mosaic.version = 11 : i64} {
  func.func @kernel(%arg0: i32, %arg1: memref<32x128xbf16, #tpu.memory_space<vmem>>, %arg2: memref<128x32xbf16, #tpu.memory_space<vmem>>, %arg3: memref<128x1xf32, #tpu.memory_space<vmem>>, %arg4: memref<64x128xbf16, #tpu.memory_space<vmem>>, %arg5: memref<64x1xf32, #tpu.memory_space<vmem>>, %arg6: memref<16x64xbf16, #tpu.memory_space<vmem>>, %arg7: memref<16x1xf32, #tpu.memory_space<vmem>>, %arg8: memref<16x128xf32, #tpu.memory_space<vmem>>) attributes {dimension_semantics = [#tpu.dimension_semantics<parallel>], iteration_bounds = array<i64: 2>, scalar_prefetch = 0 : i64, scratch_operands = 0 : i64, tpu.core_type = #tpu.core_type<tc>, window_params = [{transform_indices = @transform_0, window_bounds = array<i64: 32, 128>}, {pipeline_mode = #tpu.pipeline_mode<synchronous>, transform_indices = @transform_1, window_bounds = array<i64: 128, 32>}, {pipeline_mode = #tpu.pipeline_mode<synchronous>, transform_indices = @transform_2, window_bounds = array<i64: 128, 1>}, {pipeline_mode = #tpu.pipeline_mode<synchronous>, transform_indices = @transform_3, window_bounds = array<i64: 64, 128>}, {pipeline_mode = #tpu.pipeline_mode<synchronous>, transform_indices = @transform_4, window_bounds = array<i64: 64, 1>}, {pipeline_mode = #tpu.pipeline_mode<synchronous>, transform_indices = @transform_5, window_bounds = array<i64: 16, 64>}, {pipeline_mode = #tpu.pipeline_mode<synchronous>, transform_indices = @transform_6, window_bounds = array<i64: 16, 1>}, {transform_indices = @transform_7, window_bounds = array<i64: 16, 128>}]} {
    %c0 = arith.constant 0 : index
    %c0_0 = arith.constant 0 : index
    %0 = vector.load %arg1[%c0, %c0_0] : memref<32x128xbf16, #tpu.memory_space<vmem>>, vector<32x128xbf16>
    %c0_1 = arith.constant 0 : index
    %c0_2 = arith.constant 0 : index
    %1 = vector.load %arg2[%c0_1, %c0_2] : memref<128x32xbf16, #tpu.memory_space<vmem>>, vector<128x32xbf16>
    %c0_3 = arith.constant 0 : index
    %c0_4 = arith.constant 0 : index
    %2 = vector.load %arg3[%c0_3, %c0_4] : memref<128x1xf32, #tpu.memory_space<vmem>>, vector<128x1xf32>
    %cst = arith.constant dense<0.000000e+00> : vector<128x128xf32>
    %3 = tpu.matmul %1, %0, %cst {dimension_numbers = #tpu.dot_dimension_numbers<[1], [0], [0], [1], [0, 0, 1, 1], [], []>} : vector<128x32xbf16>, vector<32x128xbf16>, vector<128x128xf32> -> vector<128x128xf32>
    %4 = vector.broadcast %2 : vector<128x1xf32> to vector<128x128xf32>
    %5 = arith.addf %3, %4 : vector<128x128xf32>
    %cst_5 = arith.constant 0.000000e+00 : f32
    %6 = vector.broadcast %cst_5 : f32 to vector<128x128xf32>
    %7 = arith.maximumf %5, %6 : vector<128x128xf32>
    %8 = arith.truncf %7 : vector<128x128xf32> to vector<128x128xbf16>
    %c0_6 = arith.constant 0 : index
    %c0_7 = arith.constant 0 : index
    %9 = vector.load %arg4[%c0_6, %c0_7] : memref<64x128xbf16, #tpu.memory_space<vmem>>, vector<64x128xbf16>
    %c0_8 = arith.constant 0 : index
    %c0_9 = arith.constant 0 : index
    %10 = vector.load %arg5[%c0_8, %c0_9] : memref<64x1xf32, #tpu.memory_space<vmem>>, vector<64x1xf32>
    %cst_10 = arith.constant dense<0.000000e+00> : vector<64x128xf32>
    %11 = tpu.matmul %9, %8, %cst_10 {dimension_numbers = #tpu.dot_dimension_numbers<[1], [0], [0], [1], [0, 0, 1, 1], [], []>} : vector<64x128xbf16>, vector<128x128xbf16>, vector<64x128xf32> -> vector<64x128xf32>
    %12 = vector.broadcast %10 : vector<64x1xf32> to vector<64x128xf32>
    %13 = arith.addf %11, %12 : vector<64x128xf32>
    %cst_11 = arith.constant 0.000000e+00 : f32
    %14 = vector.broadcast %cst_11 : f32 to vector<64x128xf32>
    %15 = arith.maximumf %13, %14 : vector<64x128xf32>
    %16 = arith.truncf %15 : vector<64x128xf32> to vector<64x128xbf16>
    %c0_12 = arith.constant 0 : index
    %c0_13 = arith.constant 0 : index
    %17 = vector.load %arg6[%c0_12, %c0_13] : memref<16x64xbf16, #tpu.memory_space<vmem>>, vector<16x64xbf16>
    %c0_14 = arith.constant 0 : index
    %c0_15 = arith.constant 0 : index
    %18 = vector.load %arg7[%c0_14, %c0_15] : memref<16x1xf32, #tpu.memory_space<vmem>>, vector<16x1xf32>
    %cst_16 = arith.constant dense<0.000000e+00> : vector<16x128xf32>
    %19 = tpu.matmul %17, %16, %cst_16 {dimension_numbers = #tpu.dot_dimension_numbers<[1], [0], [0], [1], [0, 0, 1, 1], [], []>} : vector<16x64xbf16>, vector<64x128xbf16>, vector<16x128xf32> -> vector<16x128xf32>
    %20 = vector.broadcast %18 : vector<16x1xf32> to vector<16x128xf32>
    %21 = arith.addf %19, %20 : vector<16x128xf32>
    %cst_17 = arith.constant 0.000000e+00 : f32
    %22 = vector.broadcast %cst_17 : f32 to vector<16x128xf32>
    %23 = arith.maximumf %21, %22 : vector<16x128xf32>
    %c0_18 = arith.constant 0 : index
    %c0_19 = arith.constant 0 : index
    %24 = vector.load %arg8[%c0_18, %c0_19] : memref<16x128xf32, #tpu.memory_space<vmem>>, vector<16x128xf32>
    tpu.vector_store %arg8[%c0_18, %c0_19], %23 {strides = array<i32>} : memref<16x128xf32, #tpu.memory_space<vmem>>, vector<16x128xf32>,
    return
  }
  func.func @transform_0(%arg0: i32) -> (i32, i32) {
    %c0_i32 = arith.constant 0 : i32
    %c0_i32_0 = arith.constant 0 : i32
    return %c0_i32, %arg0 : i32, i32
  }
  func.func @transform_1(%arg0: i32) -> (i32, i32) {
    %c0_i32 = arith.constant 0 : i32
    %c0_i32_0 = arith.constant 0 : i32
    %c0_i32_1 = arith.constant 0 : i32
    return %c0_i32, %c0_i32_0 : i32, i32
  }
  func.func @transform_2(%arg0: i32) -> (i32, i32) {
    %c0_i32 = arith.constant 0 : i32
    %c0_i32_0 = arith.constant 0 : i32
    %c0_i32_1 = arith.constant 0 : i32
    return %c0_i32, %c0_i32_0 : i32, i32
  }
  func.func @transform_3(%arg0: i32) -> (i32, i32) {
    %c0_i32 = arith.constant 0 : i32
    %c0_i32_0 = arith.constant 0 : i32
    %c0_i32_1 = arith.constant 0 : i32
    return %c0_i32, %c0_i32_0 : i32, i32
  }
  func.func @transform_4(%arg0: i32) -> (i32, i32) {
    %c0_i32 = arith.constant 0 : i32
    %c0_i32_0 = arith.constant 0 : i32
    %c0_i32_1 = arith.constant 0 : i32
    return %c0_i32, %c0_i32_0 : i32, i32
  }
  func.func @transform_5(%arg0: i32) -> (i32, i32) {
    %c0_i32 = arith.constant 0 : i32
    %c0_i32_0 = arith.constant 0 : i32
    %c0_i32_1 = arith.constant 0 : i32
    return %c0_i32, %c0_i32_0 : i32, i32
  }
  func.func @transform_6(%arg0: i32) -> (i32, i32) {
    %c0_i32 = arith.constant 0 : i32
    %c0_i32_0 = arith.constant 0 : i32
    %c0_i32_1 = arith.constant 0 : i32
    return %c0_i32, %c0_i32_0 : i32, i32
  }
  func.func @transform_7(%arg0: i32) -> (i32, i32) {
    %c0_i32 = arith.constant 0 : i32
    %c0_i32_0 = arith.constant 0 : i32
    return %c0_i32, %arg0 : i32, i32
  }
}

module attributes {stable_mosaic.version = 11 : i64} {
  func.func @kernel(%arg0: i32, %arg1: memref<32x128xbf16, #tpu.memory_space<vmem>>, %arg2: memref<128x32xbf16, #tpu.memory_space<vmem>>, %arg3: memref<128x1xf32, #tpu.memory_space<vmem>>, %arg4: memref<64x128xbf16, #tpu.memory_space<vmem>>, %arg5: memref<64x1xf32, #tpu.memory_space<vmem>>, %arg6: memref<16x64xbf16, #tpu.memory_space<vmem>>, %arg7: memref<16x1xf32, #tpu.memory_space<vmem>>, %arg8: memref<16x128xf32, #tpu.memory_space<vmem>>) attributes {dimension_semantics = [#tpu.dimension_semantics<parallel>], iteration_bounds = array<i64: 2>, scalar_prefetch = 0 : i64, scratch_operands = 0 : i64, tpu.core_type = #tpu.core_type<tc>, window_params = [{transform_indices = @transform_0, window_bounds = array<i64: 32, 128>}, {pipeline_mode = #tpu.pipeline_mode<synchronous>, transform_indices = @transform_1, window_bounds = array<i64: 128, 32>}, {pipeline_mode = #tpu.pipeline_mode<synchronous>, transform_indices = @transform_2, window_bounds = array<i64: 128, 1>}, {pipeline_mode = #tpu.pipeline_mode<synchronous>, transform_indices = @transform_3, window_bounds = array<i64: 64, 128>}, {pipeline_mode = #tpu.pipeline_mode<synchronous>, transform_indices = @transform_4, window_bounds = array<i64: 64, 1>}, {pipeline_mode = #tpu.pipeline_mode<synchronous>, transform_indices = @transform_5, window_bounds = array<i64: 16, 64>}, {pipeline_mode = #tpu.pipeline_mode<synchronous>, transform_indices = @transform_6, window_bounds = array<i64: 16, 1>}, {transform_indices = @transform_7, window_bounds = array<i64: 16, 128>}]} {
    %c0 = arith.constant 0 : index
    %c0_0 = arith.constant 0 : index
    %0 = vector.load %arg1[%c0, %c0_0] : memref<32x128xbf16, #tpu.memory_space<vmem>>, vector<32x128xbf16>
    %c0_1 = arith.constant 0 : index
    %c0_2 = arith.constant 0 : index
    %1 = vector.load %arg2[%c0_1, %c0_2] : memref<128x32xbf16, #tpu.memory_space<vmem>>, vector<128x32xbf16>
    %c0_3 = arith.constant 0 : index
    %c0_4 = arith.constant 0 : index
    %2 = vector.load %arg3[%c0_3, %c0_4] : memref<128x1xf32, #tpu.memory_space<vmem>>, vector<128x1xf32>
    %cst = arith.constant dense<0.000000e+00> : vector<128x128xf32>
    %3 = tpu.matmul %1, %0, %cst {dimension_numbers = #tpu.dot_dimension_numbers<[1], [0], [0], [1], [0, 0, 1, 1], [], []>} : vector<128x32xbf16>, vector<32x128xbf16>, vector<128x128xf32> -> vector<128x128xf32>
    %4 = vector.broadcast %2 : vector<128x1xf32> to vector<128x128xf32>
    %5 = arith.addf %3, %4 : vector<128x128xf32>
    %cst_5 = arith.constant 0.000000e+00 : f32
    %6 = vector.broadcast %cst_5 : f32 to vector<128x128xf32>
    %7 = arith.maximumf %5, %6 : vector<128x128xf32>
    %8 = arith.truncf %7 : vector<128x128xf32> to vector<128x128xbf16>
    %c0_6 = arith.constant 0 : index
    %c0_7 = arith.constant 0 : index
    %9 = vector.load %arg4[%c0_6, %c0_7] : memref<64x128xbf16, #tpu.memory_space<vmem>>, vector<64x128xbf16>
    %c0_8 = arith.constant 0 : index
    %c0_9 = arith.constant 0 : index
    %10 = vector.load %arg5[%c0_8, %c0_9] : memref<64x1xf32, #tpu.memory_space<vmem>>, vector<64x1xf32>
    %cst_10 = arith.constant dense<0.000000e+00> : vector<64x128xf32>
    %11 = tpu.matmul %9, %8, %cst_10 {dimension_numbers = #tpu.dot_dimension_numbers<[1], [0], [0], [1], [0, 0, 1, 1], [], []>} : vector<64x128xbf16>, vector<128x128xbf16>, vector<64x128xf32> -> vector<64x128xf32>
    %12 = vector.broadcast %10 : vector<64x1xf32> to vector<64x128xf32>
    %13 = arith.addf %11, %12 : vector<64x128xf32>
    %cst_11 = arith.constant 0.000000e+00 : f32
    %14 = vector.broadcast %cst_11 : f32 to vector<64x128xf32>
    %15 = arith.maximumf %13, %14 : vector<64x128xf32>
    %16 = arith.truncf %15 : vector<64x128xf32> to vector<64x128xbf16>
    %c0_12 = arith.constant 0 : index
    %c0_13 = arith.constant 0 : index
    %17 = vector.load %arg6[%c0_12, %c0_13] : memref<16x64xbf16, #tpu.memory_space<vmem>>, vector<16x64xbf16>
    %c0_14 = arith.constant 0 : index
    %c0_15 = arith.constant 0 : index
    %18 = vector.load %arg7[%c0_14, %c0_15] : memref<16x1xf32, #tpu.memory_space<vmem>>, vector<16x1xf32>
    %cst_16 = arith.constant dense<0.000000e+00> : vector<16x128xf32>
    %19 = tpu.matmul %17, %16, %cst_16 {dimension_numbers = #tpu.dot_dimension_numbers<[1], [0], [0], [1], [0, 0, 1, 1], [], []>} : vector<16x64xbf16>, vector<64x128xbf16>, vector<16x128xf32> -> vector<16x128xf32>
    %20 = vector.broadcast %18 : vector<16x1xf32> to vector<16x128xf32>
    %21 = arith.addf %19, %20 : vector<16x128xf32>
    %cst_17 = arith.constant 0.000000e+00 : f32
    %22 = vector.broadcast %cst_17 : f32 to vector<16x128xf32>
    %23 = arith.maximumf %21, %22 : vector<16x128xf32>
    %c0_18 = arith.constant 0 : index
    %c0_19 = arith.constant 0 : index
    %24 = vector.load %arg8[%c0_18, %c0_19] : memref<16x128xf32, #tpu.memory_space<vmem>>, vector<16x128xf32>
    tpu.vector_store %arg8[%c0_18, %c0_19], %23 {strides = array<i32>} : memref<16x128xf32, #tpu.memory_space<vmem>>, vector<16x128xf32>,
    return
  }
  func.func @transform_0(%arg0: i32) -> (i32, i32) {
    %c0_i32 = arith.constant 0 : i32
    %c0_i32_0 = arith.constant 0 : i32
    return %c0_i32, %arg0 : i32, i32
  }
  func.func @transform_1(%arg0: i32) -> (i32, i32) {
    %c0_i32 = arith.constant 0 : i32
    %c0_i32_0 = arith.constant 0 : i32
    %c0_i32_1 = arith.constant 0 : i32
    return %c0_i32, %c0_i32_0 : i32, i32
  }
  func.func @transform_2(%arg0: i32) -> (i32, i32) {
    %c0_i32 = arith.constant 0 : i32
    %c0_i32_0 = arith.constant 0 : i32
    %c0_i32_1 = arith.constant 0 : i32
    return %c0_i32, %c0_i32_0 : i32, i32
  }
  func.func @transform_3(%arg0: i32) -> (i32, i32) {
    %c0_i32 = arith.constant 0 : i32
    %c0_i32_0 = arith.constant 0 : i32
    %c0_i32_1 = arith.constant 0 : i32
    return %c0_i32, %c0_i32_0 : i32, i32
  }
  func.func @transform_4(%arg0: i32) -> (i32, i32) {
    %c0_i32 = arith.constant 0 : i32
    %c0_i32_0 = arith.constant 0 : i32
    %c0_i32_1 = arith.constant 0 : i32
    return %c0_i32, %c0_i32_0 : i32, i32
  }
  func.func @transform_5(%arg0: i32) -> (i32, i32) {
    %c0_i32 = arith.constant 0 : i32
    %c0_i32_0 = arith.constant 0 : i32
    %c0_i32_1 = arith.constant 0 : i32
    return %c0_i32, %c0_i32_0 : i32, i32
  }
  func.func @transform_6(%arg0: i32) -> (i32, i32) {
    %c0_i32 = arith.constant 0 : i32
    %c0_i32_0 = arith.constant 0 : i32
    %c0_i32_1 = arith.constant 0 : i32
    return %c0_i32, %c0_i32_0 : i32, i32
  }
  func.func @transform_7(%arg0: i32) -> (i32, i32) {
    %c0_i32 = arith.constant 0 : i32
    %c0_i32_0 = arith.constant 0 : i32
    return %c0_i32, %arg0 : i32, i32
  }
}

</mosaic_0001>

<bundles_post_ra>
// kernel: tpu_custom_call.1
= control target key start
LH: loop header
LB: loop body
LE: loop exit
PB: predicated region body
PF: predicated region fallthrough
CT: control target
= control target key end

     0   :  { %12 = vsyncpa [#allocation4], 0  ;;  %s1336_s0 = inlined_call_operand.vmem [shape: bf16[32,256], index: 0, kind: input, shape index: {}]   ;;  %s1337_s1 = inlined_call_operand.vmem [shape: bf16[128,32], index: 1, kind: input, shape index: {}]   ;;  %s1338_s2 = inlined_call_operand.vmem [shape: f32[128,1], index: 2, kind: input, shape index: {}]   ;;  %s1339_s3 = inlined_call_operand.vmem [shape: bf16[64,128], index: 3, kind: input, shape index: {}]   ;;  %s1340_s4 = inlined_call_operand.vmem [shape: f32[64,1], index: 4, kind: input, shape index: {}]   ;;  %s1341_s5 = inlined_call_operand.vmem [shape: bf16[16,64], index: 5, kind: input, shape index: {}]   ;;  %s1342_s6 = inlined_call_operand.vmem [shape: f32[16,1], index: 6, kind: input, shape index: {}]   ;;  %s1343_s7 = inlined_call_operand.hbm [shape: f32[16,256], index: 7, kind: output, shape index: {}]  }
   0x1   :  { %14 = vsyncpa [#allocation4 + $0x1], 0  ;;  %s1104_s24 = smov 0   ;;  %s1106_s25 = smov 0  }
   0x2   :  { %s1108_s26 = smov 0   ;;  %s1110_s27 = smov 0  }
   0x3 LB: > { %s843_s28 = sadd.s32 4294967295, %s1058_s27   ;;  %s844_s29 = sadd.s32 4294967294, %s1058_s27   ;;  %s1058_s27 = sphi %s1110_s27, %s1349_s27   ;;  %s1054_s26 = sphi %s1108_s26, %s1348_s26   ;;  %s1050_s25 = sphi %s1106_s25, %s1347_s25   ;;  %s1046_s24 = sphi %s1104_s24, %s1346_s24  }
   0x4   : > { %s1127_s30 = sadd.s32 1, %s1058_s27   ;;  %s27_s8 = sadd.s32 1, %s1054_s26 }
   0x5   : > { %s24_s9 = ssub.s32 %s1058_s27, %s1127_s30  ;;  %p34_p0 = scmp.ne.s32.totalorder %s1054_s26, %s1050_s25 }
   0x6   : > { %p25_p1 = scmp.eq.s32.totalorder %s24_s9, 0  ;;  %p35_p2 = scmp.eq.s32.totalorder %s1058_s27, 0 }
   0x7   : > { %p190_p3 = scmp.eq.s32.totalorder %s843_s28, 1  ;;  %p195_p4 = scmp.ne.s32.totalorder %s1050_s25, %s1046_s24 }
   0x8   : > { %s1140_s10 = scalar_select %p25_p1, %s1054_s26, %s27_s8  }
   0x9   : > { %p36_p5 = por %p35_p2, %p34_p0  ;;  %p1142_p6 = por %p190_p3, %p34_p0 }
   0xa   : > { %p196_p7 = scmp.eq.s32.totalorder %s844_s29, 1  ;;  %p846_p9 = scmp.ge.s32.totalorder %s1058_s27, 2 }
   0xc   : > { %p1146_p8 = por %p196_p7, %p195_p4  ;;  %230 = sbr.rel (%p846_p9) target bundleno = 25 (0x19), region = 40 }
  0x11   : > { %233 = sbr.rel (!%p36_p5) target bundleno = 25 (0x19), region = 44  ;;  %s235_s13 = sand.u32 (%p36_p5), 1, %s1054_s26  }
  0x12   : > { %s848_s14 = sshll.u32 (%p36_p5), %s1058_s27, 2  ;;  %s847_s15 = sshll.u32 (%p36_p5), %s235_s13, 4 }
  0x13   : > { %s239_s18 = scalar_lea.vmem (%p36_p5), %s1336_s0, %s848_s14  ;;  %s237_s19 = scalar_lea.vmem (%p36_p5), [#allocation2], %s847_s15 }
  0x14   : > { %v256_v0 = vld [vmem:[%s239_s18] sm:$0xf] (%p36_p5)  ;;  %v258_v1 = vld [vmem:[%s239_s18 + $0x8] sm:$0xf] (%p36_p5)  ;;  %v260_v2 = vld [vmem:[%s239_s18 + $0x10] sm:$0xf] (%p36_p5) }
  0x15   : > { %257 = vst [vmem:[%s237_s19] sm:$0xf] (%p36_p5), %v256_v0  ;;  %v262_v3 = vld [vmem:[%s239_s18 + $0x18] sm:$0xf] (%p36_p5) }
  0x16   : > { %259 = vst [vmem:[%s237_s19 + $0x4] sm:$0xf] %v258_v1 }
  0x17   : > { %261 = vst [vmem:[%s237_s19 + $0x8] sm:$0xf] %v260_v2 }
  0x18   : > { %263 = vst [vmem:[%s237_s19 + $0xc] sm:$0xf] %v262_v3 }
  0x19 PF: > { %p849_p10 = scmp.ge.s32.totalorder %s1058_s27, 1  ;;  %p294_p11 = scmp.lt.s32.totalorder %s1058_s27, 3 }
  0x1b   : > { %p295_p12 = pnand %p849_p10, %p294_p11 }
  0x1c   : > { %s301_s22 = sand.u32 (!%p295_p12), 1, %s1050_s25   ;;  %s922_s15 = sshll.u32 (!%p295_p12), %s843_s28, 3 }
  0x1d   : > { %298 = sbr.rel (%p295_p12) target bundleno = 602 (0x25a), region = 85  ;;  %s1166_s23 = sshll.u32 (!%p295_p12), %s301_s22, 4 }
  0x1e   : > { %s303_s9 = scalar_lea.vmem (!%p295_p12), [#allocation2], %s1166_s23  ;;  %s772_s18 = scalar_lea.hbm (!%p295_p12), %s1343_s7, %s922_s15 }
  0x1f   : > { %s331_s19 = scalar_lea.vmem (!%p295_p12), [#allocation3], %s1166_s23  ;;  %s1303_s21 = sshll.u32 (!%p295_p12), %s772_s18, 4  ;;  %s776_s21 = int_to_ptr.hbm [resolvable:$true] %s1303_s21 }
  0x20   : > { %s773_s20 = sshll.u32 (!%p295_p12), %s331_s19, 4  ;;  %s762_s28 = scalar_lea.sflag (!%p295_p12), [#allocation4], %s301_s22  ;;  %s774_s20 = int_to_ptr.vmem [resolvable:$true] %s773_s20 }
  0x21   : > { %s1010_s29 = sshra.s32 (!%p295_p12), %s776_s21, 4  ;;  %s1016_s13 = scalar_lea.hbm (!%p295_p12), %s1343_s7, 32  ;;  %s1011_s29 = int_to_ptr.hbm [resolvable:$true] %s1010_s29 }
  0x22   : > { %v367_v4 = vld [vmem:[%s1338_s2 + $0x70] sm:$0xff]  ;;  %v1060_v5 = vmov 0   ;;  %v365_v6 = vld [vmem:[%s1338_s2 + $0x60] sm:$0xff]  ;;  %v926_v7 = vld [vmem:[%s303_s9 + $0x8] sm:$0xff]  ;;  %vm501_vm0 = vcmask 261120   ;;  %vm739_vm1 = vcmask 523264   ;;  %p1017_p2 = scmp.lt.s32.totalorder %s1011_s29, %s1343_s7 }
  0x23   : > { %993 = vset.pattern.permute.xlu0 %v1060_v5  ;;  %994 = vset.pattern.permute.xlu1 %v1060_v5  ;;  %v363_v8 = vld [vmem:[%s1338_s2 + $0x50] sm:$0xff]  ;;  %v368_v10 = vld [vmem:[%s1338_s2 + $0x78] sm:$0xff]  ;;  %v366_v11 = vld [vmem:[%s1338_s2 + $0x68] sm:$0xff]  ;;  %s1012_s8 = scalar_lea.hbm %s1011_s29, 16 }
  0x24   : > { %441 = vperm.xlu0 %993, %v367_v4   ;;  %431 = vperm.xlu1 %994, %v365_v6   ;;  %v925_v9 = vld [vmem:[%s303_s9] sm:$0xff]  ;;  %v364_v14 = vld [vmem:[%s1338_s2 + $0x58] sm:$0xff]  ;;  %v362_v16 = vld [vmem:[%s1338_s2 + $0x48] sm:$0xff]  ;;  %p1013_p13 = scmp.ne.s32.totalorder %s1011_s29, %s1012_s8  ;;  %p1018_p3 = scmp.lt.s32.totalorder %s1016_s13, %s1012_s8 }
  0x25   : > { %995 = vset.pattern.permute.xlu2 %v1060_v5  ;;  %532 = vmatpush.bf16.msra.mxu0 %v926_v7  ;;  %v927_v12 = vld [vmem:[%s1337_s1] sm:$0xff]  ;;  %v359_v17 = vld [vmem:[%s1338_s2 + $0x30] sm:$0xff]  ;;  %v360_v18 = vld [vmem:[%s1338_s2 + $0x38] sm:$0xff] }
  0x26   : > { %940 = vmatpush.bf16.msra.mxu3 %v926_v7  ;;  %421 = vperm.xlu2 %995, %v363_v8   ;;  %v931_v13 = vld [vmem:[%s1337_s1 + $0x20] sm:$0xff]  ;;  %v928_v20 = vld [vmem:[%s1337_s1 + $0x8] sm:$0xff]  ;;  %v355_v23 = vld [vmem:[%s1338_s2 + $0x10] sm:$0xff]  ;;  %p1014_p0 = pnand %p1013_p13, %p1142_p6  ;;  %p1019_p4 = por %p1018_p3, %p1017_p2 }
  0x27   : > { %v361_v15 = vld [vmem:[%s1338_s2 + $0x40] sm:$0xff]  ;;  %v932_v21 = vld [vmem:[%s1337_s1 + $0x28] sm:$0xff]  ;;  %v356_v24 = vld [vmem:[%s1338_s2 + $0x18] sm:$0xff] }
  0x28   : > { %v357_v19 = vld [vmem:[%s1338_s2 + $0x20] sm:$0xff]  ;;  %v358_v22 = vld [vmem:[%s1338_s2 + $0x28] sm:$0xff]  ;;  %v613_v27 = vld [vmem:[%s1340_s4 + $0x30] sm:$0xff]  ;;  %p1015_p1 = pneg %p1014_p0 }
  0x29   : > { %533 = vmatpush.bf16.msra.mxu0 %v925_v9  ;;  %v353_v25 = vld [vmem:[%s1338_s2] sm:$0xff]  ;;  %v354_v26 = vld [vmem:[%s1338_s2 + $0x8] sm:$0xff]  ;;  %v929_v28 = vld [vmem:[%s1337_s1 + $0x10] sm:$0xff] }
  0x2a   : > { %941 = vmatpush.bf16.msra.mxu3 %v925_v9  ;;  %v933_v29 = vld [vmem:[%s1337_s1 + $0x30] sm:$0xff]  ;;  %v614_v30 = vld [vmem:[%s1340_s4 + $0x38] sm:$0xff]  ;;  %v611_v31 = vld [vmem:[%s1340_s4 + $0x20] sm:$0xff]  ;;  %p1020_p5 = pnand %p1019_p4, %p1015_p1 }
  0x2b   : > { %v612_v32 = vld [vmem:[%s1340_s4 + $0x28] sm:$0xff]  ;;  %v609_v33 = vld [vmem:[%s1340_s4 + $0x10] sm:$0xff]  ;;  %v610_v34 = vld [vmem:[%s1340_s4 + $0x18] sm:$0xff] }
  0x2c   : > { %446 = vperm.xlu0 %993, %v368_v10   ;;  %436 = vperm.xlu1 %994, %v366_v11   ;;  %v607_v35 = vld [vmem:[%s1340_s4] sm:$0xff]  ;;  %v930_v36 = vld [vmem:[%s1337_s1 + $0x18] sm:$0xff]  ;;  %v608_v38 = vld [vmem:[%s1340_s4 + $0x8] sm:$0xff] }
  0x2d   : > { %892 = vmatmul.msk.bf16.vlgmr.msra.gmra.mxu0 %vm501_vm0, %v927_v12  ;;  %896 = vmatmul.msk.bf16.vlgmr.msra.gmra.mxu3 %vm501_vm0, %v931_v13  ;;  %v934_v37 = vld [vmem:[%s1337_s1 + $0x38] sm:$0xff]  ;;  %v722_v39 = vld [vmem:[%s1342_s6] sm:$0xff]  ;;  %v723_v40 = vld [vmem:[%s1342_s6 + $0x8] sm:$0xff] }
  0x2e   : > { %426 = vperm.xlu2 %995, %v364_v14  }
  0x34   : > { %411 = vperm.xlu0 %993, %v361_v15   ;;  %416 = vperm.xlu1 %994, %v362_v16  }
  0x36   : > { %401 = vperm.xlu2 %995, %v359_v17  }
  0x3c   : > { %406 = vperm.xlu0 %993, %v360_v18   ;;  %391 = vperm.xlu1 %994, %v357_v19  }
  0x3d   : > { %893 = vmatmul.msk.bf16.gmra.mxu0 %vm501_vm0, %v928_v20  ;;  %897 = vmatmul.msk.bf16.gmra.mxu3 %vm501_vm0, %v932_v21 }
  0x3e   : > { %396 = vperm.xlu2 %995, %v358_v22  }
  0x44   : > { %381 = vperm.xlu0 %993, %v355_v23   ;;  %386 = vperm.xlu1 %994, %v356_v24  }
  0x46   : > { %371 = vperm.xlu2 %995, %v353_v25  }
  0x4c   : > { %376 = vperm.xlu0 %993, %v354_v26   ;;  %647 = vperm.xlu1 %994, %v613_v27  }
  0x4d   : > { %894 = vmatmul.msk.bf16.gmra.mxu0 %vm501_vm0, %v929_v28  ;;  %898 = vmatmul.msk.bf16.gmra.mxu3 %vm501_vm0, %v933_v29 }
  0x4e   : > { %652 = vperm.xlu2 %995, %v614_v30  }
  0x54   : > { %637 = vperm.xlu0 %993, %v611_v31   ;;  %642 = vperm.xlu1 %994, %v612_v32  }
  0x56   : > { %627 = vperm.xlu2 %995, %v609_v33  }
  0x5c   : > { %632 = vperm.xlu0 %993, %v610_v34   ;;  %617 = vperm.xlu1 %994, %v607_v35  }
  0x5d   : > { %895 = vmatmul.msk.bf16.gmra.mxu0 %vm501_vm0, %v930_v36  ;;  %899 = vmatmul.msk.bf16.gmra.mxu3 %vm501_vm0, %v934_v37 }
  0x5e   : > { %622 = vperm.xlu2 %995, %v608_v38  }
  0x64   : > { %726 = vperm.xlu0 %993, %v722_v39   ;;  %731 = vperm.xlu1 %994, %v723_v40  }
  0x80   : > { %v422_v53 = vpop.permute.xlu2 %421 }
  0x88   : > { %v427_v58 = vpop.permute.xlu2 %426 }
  0x90   : > { %v402_v1 = vpop.permute.xlu2 %401 }
  0x96   : > { %v442_v49 = vpop.permute.xlu0 %441  ;;  %v432_v51 = vpop.permute.xlu1 %431 }
  0x98   : > { %v397_v19 = vpop.permute.xlu2 %396 }
  0x9e   : > { %v447_v54 = vpop.permute.xlu0 %446  ;;  %v437_v56 = vpop.permute.xlu1 %436 }
  0xa0   : > { %v372_v34 = vpop.permute.xlu2 %371 }
  0xa6   : > { %v412_v59 = vpop.permute.xlu0 %411  ;;  %v417_v61 = vpop.permute.xlu1 %416 }
  0xaa   : > { %v1276_v41 = vpop.f32.mrf.mxu0 }
  0xab   : > { %v536_v40 = vadd.f32 %v1276_v41, %v372_v34  ;;  %v938_v41 = vld [vmem:[%s1339_s3 + $0x18] sm:$0xff] }
  0xae   : > { %v407_v4 = vpop.permute.xlu0 %406  ;;  %v392_v17 = vpop.permute.xlu1 %391 }
  0xb0   : > { %v555_v42 = vpop.f32.mrf.mxu3 }
  0xb1   : > { %v556_v16 = vadd.f32 %v555_v42, %v412_v59 }
  0xb2   : > { %v1278_v43 = vpop.f32.mrf.mxu0 }
  0xb3   : > { %v583_v26 = vmax.f32 %v556_v16, 0.0 }
  0xb6   : > { %v382_v21 = vpop.permute.xlu0 %381  ;;  %v387_v33 = vpop.permute.xlu1 %386 }
  0xb8   : > { %v557_v44 = vpop.f32.mrf.mxu3 }
  0xb9   : > { %v558_v13 = vadd.f32 %v557_v44, %v417_v61 }
  0xba   : > { %v540_v45 = vpop.f32.mrf.mxu0 }
  0xbb   : > { %v584_v22 = vmax.f32 %v558_v13, 0.0  ;;  %v541_v32 = vadd.f32 %v540_v45, %v382_v21  ;;  %v575_v45 = vmax.f32 %v536_v40, 0.0 }
  0xbd   : > { %v595_v27 = vpack.c.bf16 %v584_v22, %v583_v26  ;;  %v577_v42 = vmax.f32 %v541_v32, 0.0 }
  0xbe   : > { %v377_v39 = vpop.permute.xlu0 %376 }
  0xbf   : > { %v538_v44 = vadd.f32 %v1278_v43, %v377_v39  ;;  %v936_v43 = vld [vmem:[%s1339_s3 + $0x8] sm:$0xff] }
  0xc0   : > { %v560_v46 = vpop.f32.mrf.mxu3 }
  0xc1   : > { %v561_v11 = vadd.f32 %v560_v46, %v422_v53 }
  0xc2   : > { %v542_v48 = vpop.f32.mrf.mxu0 }
  0xc3   : > { %v585_v20 = vmax.f32 %v561_v11, 0.0  ;;  %v543_v35 = vadd.f32 %v542_v48, %v387_v33 }
  0xc5   : > { %v578_v46 = vmax.f32 %v543_v35, 0.0 }
  0xc8   : > { %v562_v47 = vpop.f32.mrf.mxu3 }
  0xc9   : > { %v563_v8 = vadd.f32 %v562_v47, %v427_v58  ;;  %v653_v58 = vpop.permute.xlu2 %652 }
  0xca   : > { %v545_v52 = vpop.f32.mrf.mxu0 }
  0xcb   : > { %v586_v14 = vmax.f32 %v563_v8, 0.0  ;;  %v546_v28 = vadd.f32 %v545_v52, %v392_v17  ;;  %v937_v52 = vld [vmem:[%s1339_s3 + $0x10] sm:$0xff] }
  0xcd   : > { %v596_v25 = vpack.c.bf16 %v586_v14, %v585_v20  ;;  %v579_v36 = vmax.f32 %v546_v28, 0.0 }
  0xd0   : > { %v565_v50 = vpop.f32.mrf.mxu3 }
  0xd1   : > { %v566_v5 = vadd.f32 %v565_v50, %v432_v51  ;;  %v592_v50 = vpack.c.bf16 %v578_v46, %v577_v42  ;;  %v935_v51 = vld [vmem:[%s1339_s3] sm:$0xff] }
  0xd2   : > { %v547_v57 = vpop.f32.mrf.mxu0 }
  0xd3   : > { %v587_v12 = vmax.f32 %v566_v5, 0.0  ;;  %v548_v29 = vadd.f32 %v547_v57, %v397_v19 }
  0xd5   : > { %v580_v37 = vmax.f32 %v548_v29, 0.0 }
  0xd7   : > { %v593_v47 = vpack.c.bf16 %v580_v37, %v579_v36 }
  0xd8   : > { %v567_v55 = vpop.f32.mrf.mxu3 }
  0xd9   : > { %v568_v2 = vadd.f32 %v567_v55, %v437_v56  ;;  %v648_v56 = vpop.permute.xlu1 %647 }
  0xda   : > { %v550_v63 = vpop.f32.mrf.mxu0 }
  0xdb   : > { %v588_v9 = vmax.f32 %v568_v2, 0.0  ;;  %v551_v23 = vadd.f32 %v550_v63, %v402_v1  ;;  %v638_v2 = vpop.permute.xlu0 %637 }
  0xdd   : > { %v597_v15 = vpack.c.bf16 %v588_v9, %v587_v12  ;;  %v581_v30 = vmax.f32 %v551_v23, 0.0 }
  0xe0   : > { %v570_v60 = vpop.f32.mrf.mxu3 }
  0xe1   : > { %v571_v62 = vadd.f32 %v570_v60, %v442_v49  ;;  %v576_v49 = vmax.f32 %v538_v44, 0.0  ;;  %v643_v5 = vpop.permute.xlu1 %642 }
  0xe2   : > { %v552_v18 = vpop.f32.mrf.mxu0 }
  0xe3   : > { %v589_v6 = vmax.f32 %v571_v62, 0.0  ;;  %v553_v24 = vadd.f32 %v552_v18, %v407_v4  ;;  %v591_v48 = vpack.c.bf16 %v576_v49, %v575_v45  ;;  %v628_v4 = vpop.permute.xlu2 %627 }
  0xe5   : > { %v582_v31 = vmax.f32 %v553_v24, 0.0 }
  0xe7   : > { %v594_v38 = vpack.c.bf16 %v582_v31, %v581_v30 }
  0xe8   : > { %v572_v0 = vpop.f32.mrf.mxu3 }
  0xe9   : > { %v573_v3 = vadd.f32 %v572_v0, %v447_v54  ;;  %v618_v18 = vpop.permute.xlu1 %617 }
  0xeb   : > { %v590_v7 = vmax.f32 %v573_v3, 0.0  ;;  %v623_v14 = vpop.permute.xlu2 %622 }
  0xed   : > { %v598_v10 = vpack.c.bf16 %v590_v7, %v589_v6  ;;  %v633_v7 = vpop.permute.xlu0 %632 }
  0xef   : > { %679 = vmatpush.bf16.msra.mxu1 %v598_v10  ;;  %942 = vmatpush.bf16.msra.mxu2 %v598_v10 }
  0xf1   : > { %v732_v30 = vpop.permute.xlu1 %731 }
  0xf3   : > { %680 = vmatpush.bf16.msra.mxu1 %v597_v15  ;;  %943 = vmatpush.bf16.msra.mxu2 %v597_v15 }
  0xf5   : > { %v727_v26 = vpop.permute.xlu0 %726 }
  0xf7   : > { %681 = vmatpush.bf16.msra.mxu1 %v596_v25  ;;  %944 = vmatpush.bf16.msra.mxu2 %v596_v25  ;;  %v939_v25 = vld [vmem:[%s1341_s5] sm:$0xff] }
  0xfb   : > { %682 = vmatpush.bf16.msra.mxu1 %v595_v27  ;;  %945 = vmatpush.bf16.msra.mxu2 %v595_v27 }
  0xff   : > { %683 = vmatpush.bf16.msra.mxu1 %v594_v38  ;;  %946 = vmatpush.bf16.msra.mxu2 %v594_v38 }
 0x103   : > { %684 = vmatpush.bf16.msra.mxu1 %v593_v47  ;;  %947 = vmatpush.bf16.msra.mxu2 %v593_v47 }
 0x107   : > { %685 = vmatpush.bf16.msra.mxu1 %v592_v50  ;;  %948 = vmatpush.bf16.msra.mxu2 %v592_v50 }
 0x10b   : > { %686 = vmatpush.bf16.msra.mxu1 %v591_v48  ;;  %949 = vmatpush.bf16.msra.mxu2 %v591_v48 }
 0x10e   : > { %687 = vmatmul.bf16.vlgmr.msra.gmra.mxu1 %v935_v51  ;;  %702 = vmatmul.bf16.vlgmr.msra.gmra.mxu2 %v938_v41 }
 0x11e   : > { %692 = vmatmul.bf16.gmra.mxu1 %v936_v43 }
 0x12e   : > { %697 = vmatmul.bf16.gmra.mxu1 %v937_v52 }
 0x18b   : > { %v688_v53 = vpop.f32.mrf.mxu1 }
 0x18c   : > { %v689_v19 = vadd.f32 %v688_v53, %v618_v18 }
 0x18e   : > { %v708_v23 = vmax.f32 %v689_v19, 0.0 }
 0x191   : > { %v703_v54 = vpop.f32.mrf.mxu2 }
 0x192   : > { %v704_v57 = vadd.f32 %v703_v54, %v648_v56 }
 0x193   : > { %v690_v55 = vpop.f32.mrf.mxu1 }
 0x194   : > { %v714_v62 = vmax.f32 %v704_v57, 0.0  ;;  %v691_v15 = vadd.f32 %v690_v55, %v623_v14 }
 0x196   : > { %v709_v21 = vmax.f32 %v691_v15, 0.0 }
 0x198   : > { %v716_v24 = vpack.c.bf16 %v709_v21, %v708_v23 }
 0x199   : > { %v705_v59 = vpop.f32.mrf.mxu2 }
 0x19a   : > { %v706_v60 = vadd.f32 %v705_v59, %v653_v58 }
 0x19b   : > { %v693_v61 = vpop.f32.mrf.mxu1 }
 0x19c   : > { %v715_v63 = vmax.f32 %v706_v60, 0.0  ;;  %v694_v11 = vadd.f32 %v693_v61, %v628_v4 }
 0x19e   : > { %v719_v0 = vpack.c.bf16 %v715_v63, %v714_v62  ;;  %v710_v20 = vmax.f32 %v694_v11, 0.0 }
 0x1a0   : > { %747 = vmatpush.bf16.msrb.mxu2 %v719_v0 }
 0x1a3   : > { %v695_v1 = vpop.f32.mrf.mxu1 }
 0x1a4   : > { %v696_v9 = vadd.f32 %v695_v1, %v633_v7 }
 0x1a6   : > { %v711_v16 = vmax.f32 %v696_v9, 0.0 }
 0x1a8   : > { %v717_v22 = vpack.c.bf16 %v711_v16, %v710_v20 }
 0x1ab   : > { %v698_v3 = vpop.f32.mrf.mxu1 }
 0x1ac   : > { %v699_v6 = vadd.f32 %v698_v3, %v638_v2 }
 0x1ae   : > { %v712_v12 = vmax.f32 %v699_v6, 0.0 }
 0x1b3   : > { %v700_v8 = vpop.f32.mrf.mxu1 }
 0x1b4   : > { %v701_v10 = vadd.f32 %v700_v8, %v643_v5 }
 0x1b6   : > { %v713_v13 = vmax.f32 %v701_v10, 0.0 }
 0x1b8   : > { %v718_v17 = vpack.c.bf16 %v713_v13, %v712_v12 }
 0x1ba   : > { %748 = vmatpush.bf16.msrb.mxu2 %v718_v17 }
 0x1be   : > { %749 = vmatpush.bf16.msrb.mxu2 %v717_v22 }
 0x1c2   : > { %750 = vmatpush.bf16.msrb.mxu2 %v716_v24 }
 0x1c5   : > { %920 = vmatmul.msk.bf16.vlgmr.msrb.gmra.mxu2 %vm739_vm1, %v939_v25 }
 0x248   : > { %v752_v27 = vpop.f32.mrf.mxu2 }
 0x249   : > { %v753_v28 = vadd.f32 %v752_v27, %v727_v26 }
 0x24b   : > { %v757_v29 = vmax.f32 %v753_v28, 0.0 }
 0x24d   : > { %759 = vst [vmem:[%s331_s19] sm:$0xff] %v757_v29 }
 0x250   : > { %v754_v31 = vpop.f32.mrf.mxu2 }
 0x251   : > { %v755_v32 = vadd.f32 %v754_v31, %v732_v30 }
 0x253   : > { %v758_v33 = vmax.f32 %v755_v32, 0.0 }
 0x255   : > { %760 = vst [vmem:[%s331_s19 + $0x8] sm:$0xff] %v758_v33 }
 0x256   : > { %1023 = shalt.err (!%p1020_p5)
}
 0x257   : > { %s1061_s22 = smov 128   ;;  %s1062_s16 = smov 256  }
 0x258   : > { %s1063_s17 = smov 8  }
 0x259   : > { %950 = dma.vmem_to_hbm [thread:$0]  (%p1142_p6), %s774_s20, 256, %s776_s21, %s762_s28, %s1061_s22, %s1062_s16, %s1063_s17  }
 0x25a PF: > { %s790_s18 = sand.u32 1, %s1046_s24   ;;  %p953_p7 = pnand %p846_p9, %p1146_p8 }
 0x25b   : > { %s791_s19 = scalar_lea.sflag [#allocation4], %s790_s18 }
 0x25c   : > { %p954_p10 = pneg %p953_p7 }
 0x25e   : > { %1041 = dma.done.wait (%p954_p10), %s791_s19, 256  }
 0x25f   : > { %1043 = vsyncadd (%p954_p10), %s791_s19, 4294967040  ;;  %p17_p11 = scmp.ge.s32.totalorder %s1127_s30, 4   ;;  %s1346_s24 = smov %s1050_s25 }
 0x260   : > { %s1347_s25 = smov %s1054_s26  ;;  %s1348_s26 = smov %s1140_s10 }
 0x261   : > { %s1349_s27 = smov %s1127_s30  ;;  %19 = sbr.rel (!%p17_p11) target bundleno = 3 (0x3), region = 129 }
 0x266   :  { %797 = vsyncpa [#allocation4], 1 }
 0x267   :  { %799 = vsyncpa [#allocation4 + $0x1], 1 }

// kernel: tpu_custom_call.1
= control target key start
LH: loop header
LB: loop body
LE: loop exit
PB: predicated region body
PF: predicated region fallthrough
CT: control target
= control target key end

     0   :  { %12 = vsyncpa [#allocation4], 0  ;;  %s1336_s0 = inlined_call_operand.vmem [shape: bf16[32,256], index: 0, kind: input, shape index: {}]   ;;  %s1337_s1 = inlined_call_operand.vmem [shape: bf16[128,32], index: 1, kind: input, shape index: {}]   ;;  %s1338_s2 = inlined_call_operand.vmem [shape: f32[128,1], index: 2, kind: input, shape index: {}]   ;;  %s1339_s3 = inlined_call_operand.vmem [shape: bf16[64,128], index: 3, kind: input, shape index: {}]   ;;  %s1340_s4 = inlined_call_operand.vmem [shape: f32[64,1], index: 4, kind: input, shape index: {}]   ;;  %s1341_s5 = inlined_call_operand.vmem [shape: bf16[16,64], index: 5, kind: input, shape index: {}]   ;;  %s1342_s6 = inlined_call_operand.vmem [shape: f32[16,1], index: 6, kind: input, shape index: {}]   ;;  %s1343_s7 = inlined_call_operand.hbm [shape: f32[16,256], index: 7, kind: output, shape index: {}]  }
   0x1   :  { %14 = vsyncpa [#allocation4 + $0x1], 0  ;;  %s1104_s24 = smov 0   ;;  %s1106_s25 = smov 0  }
   0x2   :  { %s1108_s26 = smov 0   ;;  %s1110_s27 = smov 0  }
   0x3 LB: > { %s843_s28 = sadd.s32 4294967295, %s1058_s27   ;;  %s844_s29 = sadd.s32 4294967294, %s1058_s27   ;;  %s1058_s27 = sphi %s1110_s27, %s1349_s27   ;;  %s1054_s26 = sphi %s1108_s26, %s1348_s26   ;;  %s1050_s25 = sphi %s1106_s25, %s1347_s25   ;;  %s1046_s24 = sphi %s1104_s24, %s1346_s24  }
   0x4   : > { %s1127_s30 = sadd.s32 1, %s1058_s27   ;;  %s27_s8 = sadd.s32 1, %s1054_s26 }
   0x5   : > { %s24_s9 = ssub.s32 %s1058_s27, %s1127_s30  ;;  %p34_p0 = scmp.ne.s32.totalorder %s1054_s26, %s1050_s25 }
   0x6   : > { %p25_p1 = scmp.eq.s32.totalorder %s24_s9, 0  ;;  %p35_p2 = scmp.eq.s32.totalorder %s1058_s27, 0 }
   0x7   : > { %p190_p3 = scmp.eq.s32.totalorder %s843_s28, 1  ;;  %p195_p4 = scmp.ne.s32.totalorder %s1050_s25, %s1046_s24 }
   0x8   : > { %s1140_s10 = scalar_select %p25_p1, %s1054_s26, %s27_s8  }
   0x9   : > { %p36_p5 = por %p35_p2, %p34_p0  ;;  %p1142_p6 = por %p190_p3, %p34_p0 }
   0xa   : > { %p196_p7 = scmp.eq.s32.totalorder %s844_s29, 1  ;;  %p846_p9 = scmp.ge.s32.totalorder %s1058_s27, 2 }
   0xc   : > { %p1146_p8 = por %p196_p7, %p195_p4  ;;  %230 = sbr.rel (%p846_p9) target bundleno = 25 (0x19), region = 40 }
  0x11   : > { %233 = sbr.rel (!%p36_p5) target bundleno = 25 (0x19), region = 44  ;;  %s235_s13 = sand.u32 (%p36_p5), 1, %s1054_s26  }
  0x12   : > { %s848_s14 = sshll.u32 (%p36_p5), %s1058_s27, 2  ;;  %s847_s15 = sshll.u32 (%p36_p5), %s235_s13, 4 }
  0x13   : > { %s239_s18 = scalar_lea.vmem (%p36_p5), %s1336_s0, %s848_s14  ;;  %s237_s19 = scalar_lea.vmem (%p36_p5), [#allocation2], %s847_s15 }
  0x14   : > { %v256_v0 = vld [vmem:[%s239_s18] sm:$0xf] (%p36_p5)  ;;  %v258_v1 = vld [vmem:[%s239_s18 + $0x8] sm:$0xf] (%p36_p5)  ;;  %v260_v2 = vld [vmem:[%s239_s18 + $0x10] sm:$0xf] (%p36_p5) }
  0x15   : > { %257 = vst [vmem:[%s237_s19] sm:$0xf] (%p36_p5), %v256_v0  ;;  %v262_v3 = vld [vmem:[%s239_s18 + $0x18] sm:$0xf] (%p36_p5) }
  0x16   : > { %259 = vst [vmem:[%s237_s19 + $0x4] sm:$0xf] %v258_v1 }
  0x17   : > { %261 = vst [vmem:[%s237_s19 + $0x8] sm:$0xf] %v260_v2 }
  0x18   : > { %263 = vst [vmem:[%s237_s19 + $0xc] sm:$0xf] %v262_v3 }
  0x19 PF: > { %p849_p10 = scmp.ge.s32.totalorder %s1058_s27, 1  ;;  %p294_p11 = scmp.lt.s32.totalorder %s1058_s27, 3 }
  0x1b   : > { %p295_p12 = pnand %p849_p10, %p294_p11 }
  0x1c   : > { %s301_s22 = sand.u32 (!%p295_p12), 1, %s1050_s25   ;;  %s922_s15 = sshll.u32 (!%p295_p12), %s843_s28, 3 }
  0x1d   : > { %298 = sbr.rel (%p295_p12) target bundleno = 602 (0x25a), region = 85  ;;  %s1166_s23 = sshll.u32 (!%p295_p12), %s301_s22, 4 }
  0x1e   : > { %s303_s9 = scalar_lea.vmem (!%p295_p12), [#allocation2], %s1166_s23  ;;  %s772_s18 = scalar_lea.hbm (!%p295_p12), %s1343_s7, %s922_s15 }
  0x1f   : > { %s331_s19 = scalar_lea.vmem (!%p295_p12), [#allocation3], %s1166_s23  ;;  %s1303_s21 = sshll.u32 (!%p295_p12), %s772_s18, 4  ;;  %s776_s21 = int_to_ptr.hbm [resolvable:$true] %s1303_s21 }
  0x20   : > { %s773_s20 = sshll.u32 (!%p295_p12), %s331_s19, 4  ;;  %s762_s28 = scalar_lea.sflag (!%p295_p12), [#allocation4], %s301_s22  ;;  %s774_s20 = int_to_ptr.vmem [resolvable:$true] %s773_s20 }
  0x21   : > { %s1010_s29 = sshra.s32 (!%p295_p12), %s776_s21, 4  ;;  %s1016_s13 = scalar_lea.hbm (!%p295_p12), %s1343_s7, 32  ;;  %s1011_s29 = int_to_ptr.hbm [resolvable:$true] %s1010_s29 }
  0x22   : > { %v367_v4 = vld [vmem:[%s1338_s2 + $0x70] sm:$0xff]  ;;  %v1060_v5 = vmov 0   ;;  %v365_v6 = vld [vmem:[%s1338_s2 + $0x60] sm:$0xff]  ;;  %v926_v7 = vld [vmem:[%s303_s9 + $0x8] sm:$0xff]  ;;  %vm501_vm0 = vcmask 261120   ;;  %vm739_vm1 = vcmask 523264   ;;  %p1017_p2 = scmp.lt.s32.totalorder %s1011_s29, %s1343_s7 }
  0x23   : > { %993 = vset.pattern.permute.xlu0 %v1060_v5  ;;  %994 = vset.pattern.permute.xlu1 %v1060_v5  ;;  %v363_v8 = vld [vmem:[%s1338_s2 + $0x50] sm:$0xff]  ;;  %v368_v10 = vld [vmem:[%s1338_s2 + $0x78] sm:$0xff]  ;;  %v366_v11 = vld [vmem:[%s1338_s2 + $0x68] sm:$0xff]  ;;  %s1012_s8 = scalar_lea.hbm %s1011_s29, 16 }
  0x24   : > { %441 = vperm.xlu0 %993, %v367_v4   ;;  %431 = vperm.xlu1 %994, %v365_v6   ;;  %v925_v9 = vld [vmem:[%s303_s9] sm:$0xff]  ;;  %v364_v14 = vld [vmem:[%s1338_s2 + $0x58] sm:$0xff]  ;;  %v362_v16 = vld [vmem:[%s1338_s2 + $0x48] sm:$0xff]  ;;  %p1013_p13 = scmp.ne.s32.totalorder %s1011_s29, %s1012_s8  ;;  %p1018_p3 = scmp.lt.s32.totalorder %s1016_s13, %s1012_s8 }
  0x25   : > { %995 = vset.pattern.permute.xlu2 %v1060_v5  ;;  %532 = vmatpush.bf16.msra.mxu0 %v926_v7  ;;  %v927_v12 = vld [vmem:[%s1337_s1] sm:$0xff]  ;;  %v359_v17 = vld [vmem:[%s1338_s2 + $0x30] sm:$0xff]  ;;  %v360_v18 = vld [vmem:[%s1338_s2 + $0x38] sm:$0xff] }
  0x26   : > { %940 = vmatpush.bf16.msra.mxu3 %v926_v7  ;;  %421 = vperm.xlu2 %995, %v363_v8   ;;  %v931_v13 = vld [vmem:[%s1337_s1 + $0x20] sm:$0xff]  ;;  %v928_v20 = vld [vmem:[%s1337_s1 + $0x8] sm:$0xff]  ;;  %v355_v23 = vld [vmem:[%s1338_s2 + $0x10] sm:$0xff]  ;;  %p1014_p0 = pnand %p1013_p13, %p1142_p6  ;;  %p1019_p4 = por %p1018_p3, %p1017_p2 }
  0x27   : > { %v361_v15 = vld [vmem:[%s1338_s2 + $0x40] sm:$0xff]  ;;  %v932_v21 = vld [vmem:[%s1337_s1 + $0x28] sm:$0xff]  ;;  %v356_v24 = vld [vmem:[%s1338_s2 + $0x18] sm:$0xff] }
  0x28   : > { %v357_v19 = vld [vmem:[%s1338_s2 + $0x20] sm:$0xff]  ;;  %v358_v22 = vld [vmem:[%s1338_s2 + $0x28] sm:$0xff]  ;;  %v613_v27 = vld [vmem:[%s1340_s4 + $0x30] sm:$0xff]  ;;  %p1015_p1 = pneg %p1014_p0 }
  0x29   : > { %533 = vmatpush.bf16.msra.mxu0 %v925_v9  ;;  %v353_v25 = vld [vmem:[%s1338_s2] sm:$0xff]  ;;  %v354_v26 = vld [vmem:[%s1338_s2 + $0x8] sm:$0xff]  ;;  %v929_v28 = vld [vmem:[%s1337_s1 + $0x10] sm:$0xff] }
  0x2a   : > { %941 = vmatpush.bf16.msra.mxu3 %v925_v9  ;;  %v933_v29 = vld [vmem:[%s1337_s1 + $0x30] sm:$0xff]  ;;  %v614_v30 = vld [vmem:[%s1340_s4 + $0x38] sm:$0xff]  ;;  %v611_v31 = vld [vmem:[%s1340_s4 + $0x20] sm:$0xff]  ;;  %p1020_p5 = pnand %p1019_p4, %p1015_p1 }
  0x2b   : > { %v612_v32 = vld [vmem:[%s1340_s4 + $0x28] sm:$0xff]  ;;  %v609_v33 = vld [vmem:[%s1340_s4 + $0x10] sm:$0xff]  ;;  %v610_v34 = vld [vmem:[%s1340_s4 + $0x18] sm:$0xff] }
  0x2c   : > { %446 = vperm.xlu0 %993, %v368_v10   ;;  %436 = vperm.xlu1 %994, %v366_v11   ;;  %v607_v35 = vld [vmem:[%s1340_s4] sm:$0xff]  ;;  %v930_v36 = vld [vmem:[%s1337_s1 + $0x18] sm:$0xff]  ;;  %v608_v38 = vld [vmem:[%s1340_s4 + $0x8] sm:$0xff] }
  0x2d   : > { %892 = vmatmul.msk.bf16.vlgmr.msra.gmra.mxu0 %vm501_vm0, %v927_v12  ;;  %896 = vmatmul.msk.bf16.vlgmr.msra.gmra.mxu3 %vm501_vm0, %v931_v13  ;;  %v934_v37 = vld [vmem:[%s1337_s1 + $0x38] sm:$0xff]  ;;  %v722_v39 = vld [vmem:[%s1342_s6] sm:$0xff]  ;;  %v723_v40 = vld [vmem:[%s1342_s6 + $0x8] sm:$0xff] }
  0x2e   : > { %426 = vperm.xlu2 %995, %v364_v14  }
  0x34   : > { %411 = vperm.xlu0 %993, %v361_v15   ;;  %416 = vperm.xlu1 %994, %v362_v16  }
  0x36   : > { %401 = vperm.xlu2 %995, %v359_v17  }
  0x3c   : > { %406 = vperm.xlu0 %993, %v360_v18   ;;  %391 = vperm.xlu1 %994, %v357_v19  }
  0x3d   : > { %893 = vmatmul.msk.bf16.gmra.mxu0 %vm501_vm0, %v928_v20  ;;  %897 = vmatmul.msk.bf16.gmra.mxu3 %vm501_vm0, %v932_v21 }
  0x3e   : > { %396 = vperm.xlu2 %995, %v358_v22  }
  0x44   : > { %381 = vperm.xlu0 %993, %v355_v23   ;;  %386 = vperm.xlu1 %994, %v356_v24  }
  0x46   : > { %371 = vperm.xlu2 %995, %v353_v25  }
  0x4c   : > { %376 = vperm.xlu0 %993, %v354_v26   ;;  %647 = vperm.xlu1 %994, %v613_v27  }
  0x4d   : > { %894 = vmatmul.msk.bf16.gmra.mxu0 %vm501_vm0, %v929_v28  ;;  %898 = vmatmul.msk.bf16.gmra.mxu3 %vm501_vm0, %v933_v29 }
  0x4e   : > { %652 = vperm.xlu2 %995, %v614_v30  }
  0x54   : > { %637 = vperm.xlu0 %993, %v611_v31   ;;  %642 = vperm.xlu1 %994, %v612_v32  }
  0x56   : > { %627 = vperm.xlu2 %995, %v609_v33  }
  0x5c   : > { %632 = vperm.xlu0 %993, %v610_v34   ;;  %617 = vperm.xlu1 %994, %v607_v35  }
  0x5d   : > { %895 = vmatmul.msk.bf16.gmra.mxu0 %vm501_vm0, %v930_v36  ;;  %899 = vmatmul.msk.bf16.gmra.mxu3 %vm501_vm0, %v934_v37 }
  0x5e   : > { %622 = vperm.xlu2 %995, %v608_v38  }
  0x64   : > { %726 = vperm.xlu0 %993, %v722_v39   ;;  %731 = vperm.xlu1 %994, %v723_v40  }
  0x80   : > { %v422_v53 = vpop.permute.xlu2 %421 }
  0x88   : > { %v427_v58 = vpop.permute.xlu2 %426 }
  0x90   : > { %v402_v1 = vpop.permute.xlu2 %401 }
  0x96   : > { %v442_v49 = vpop.permute.xlu0 %441  ;;  %v432_v51 = vpop.permute.xlu1 %431 }
  0x98   : > { %v397_v19 = vpop.permute.xlu2 %396 }
  0x9e   : > { %v447_v54 = vpop.permute.xlu0 %446  ;;  %v437_v56 = vpop.permute.xlu1 %436 }
  0xa0   : > { %v372_v34 = vpop.permute.xlu2 %371 }
  0xa6   : > { %v412_v59 = vpop.permute.xlu0 %411  ;;  %v417_v61 = vpop.permute.xlu1 %416 }
  0xaa   : > { %v1276_v41 = vpop.f32.mrf.mxu0 }
  0xab   : > { %v536_v40 = vadd.f32 %v1276_v41, %v372_v34  ;;  %v938_v41 = vld [vmem:[%s1339_s3 + $0x18] sm:$0xff] }
  0xae   : > { %v407_v4 = vpop.permute.xlu0 %406  ;;  %v392_v17 = vpop.permute.xlu1 %391 }
  0xb0   : > { %v555_v42 = vpop.f32.mrf.mxu3 }
  0xb1   : > { %v556_v16 = vadd.f32 %v555_v42, %v412_v59 }
  0xb2   : > { %v1278_v43 = vpop.f32.mrf.mxu0 }
  0xb3   : > { %v583_v26 = vmax.f32 %v556_v16, 0.0 }
  0xb6   : > { %v382_v21 = vpop.permute.xlu0 %381  ;;  %v387_v33 = vpop.permute.xlu1 %386 }
  0xb8   : > { %v557_v44 = vpop.f32.mrf.mxu3 }
  0xb9   : > { %v558_v13 = vadd.f32 %v557_v44, %v417_v61 }
  0xba   : > { %v540_v45 = vpop.f32.mrf.mxu0 }
  0xbb   : > { %v584_v22 = vmax.f32 %v558_v13, 0.0  ;;  %v541_v32 = vadd.f32 %v540_v45, %v382_v21  ;;  %v575_v45 = vmax.f32 %v536_v40, 0.0 }
  0xbd   : > { %v595_v27 = vpack.c.bf16 %v584_v22, %v583_v26  ;;  %v577_v42 = vmax.f32 %v541_v32, 0.0 }
  0xbe   : > { %v377_v39 = vpop.permute.xlu0 %376 }
  0xbf   : > { %v538_v44 = vadd.f32 %v1278_v43, %v377_v39  ;;  %v936_v43 = vld [vmem:[%s1339_s3 + $0x8] sm:$0xff] }
  0xc0   : > { %v560_v46 = vpop.f32.mrf.mxu3 }
  0xc1   : > { %v561_v11 = vadd.f32 %v560_v46, %v422_v53 }
  0xc2   : > { %v542_v48 = vpop.f32.mrf.mxu0 }
  0xc3   : > { %v585_v20 = vmax.f32 %v561_v11, 0.0  ;;  %v543_v35 = vadd.f32 %v542_v48, %v387_v33 }
  0xc5   : > { %v578_v46 = vmax.f32 %v543_v35, 0.0 }
  0xc8   : > { %v562_v47 = vpop.f32.mrf.mxu3 }
  0xc9   : > { %v563_v8 = vadd.f32 %v562_v47, %v427_v58  ;;  %v653_v58 = vpop.permute.xlu2 %652 }
  0xca   : > { %v545_v52 = vpop.f32.mrf.mxu0 }
  0xcb   : > { %v586_v14 = vmax.f32 %v563_v8, 0.0  ;;  %v546_v28 = vadd.f32 %v545_v52, %v392_v17  ;;  %v937_v52 = vld [vmem:[%s1339_s3 + $0x10] sm:$0xff] }
  0xcd   : > { %v596_v25 = vpack.c.bf16 %v586_v14, %v585_v20  ;;  %v579_v36 = vmax.f32 %v546_v28, 0.0 }
  0xd0   : > { %v565_v50 = vpop.f32.mrf.mxu3 }
  0xd1   : > { %v566_v5 = vadd.f32 %v565_v50, %v432_v51  ;;  %v592_v50 = vpack.c.bf16 %v578_v46, %v577_v42  ;;  %v935_v51 = vld [vmem:[%s1339_s3] sm:$0xff] }
  0xd2   : > { %v547_v57 = vpop.f32.mrf.mxu0 }
  0xd3   : > { %v587_v12 = vmax.f32 %v566_v5, 0.0  ;;  %v548_v29 = vadd.f32 %v547_v57, %v397_v19 }
  0xd5   : > { %v580_v37 = vmax.f32 %v548_v29, 0.0 }
  0xd7   : > { %v593_v47 = vpack.c.bf16 %v580_v37, %v579_v36 }
  0xd8   : > { %v567_v55 = vpop.f32.mrf.mxu3 }
  0xd9   : > { %v568_v2 = vadd.f32 %v567_v55, %v437_v56  ;;  %v648_v56 = vpop.permute.xlu1 %647 }
  0xda   : > { %v550_v63 = vpop.f32.mrf.mxu0 }
  0xdb   : > { %v588_v9 = vmax.f32 %v568_v2, 0.0  ;;  %v551_v23 = vadd.f32 %v550_v63, %v402_v1  ;;  %v638_v2 = vpop.permute.xlu0 %637 }
  0xdd   : > { %v597_v15 = vpack.c.bf16 %v588_v9, %v587_v12  ;;  %v581_v30 = vmax.f32 %v551_v23, 0.0 }
  0xe0   : > { %v570_v60 = vpop.f32.mrf.mxu3 }
  0xe1   : > { %v571_v62 = vadd.f32 %v570_v60, %v442_v49  ;;  %v576_v49 = vmax.f32 %v538_v44, 0.0  ;;  %v643_v5 = vpop.permute.xlu1 %642 }
  0xe2   : > { %v552_v18 = vpop.f32.mrf.mxu0 }
  0xe3   : > { %v589_v6 = vmax.f32 %v571_v62, 0.0  ;;  %v553_v24 = vadd.f32 %v552_v18, %v407_v4  ;;  %v591_v48 = vpack.c.bf16 %v576_v49, %v575_v45  ;;  %v628_v4 = vpop.permute.xlu2 %627 }
  0xe5   : > { %v582_v31 = vmax.f32 %v553_v24, 0.0 }
  0xe7   : > { %v594_v38 = vpack.c.bf16 %v582_v31, %v581_v30 }
  0xe8   : > { %v572_v0 = vpop.f32.mrf.mxu3 }
  0xe9   : > { %v573_v3 = vadd.f32 %v572_v0, %v447_v54  ;;  %v618_v18 = vpop.permute.xlu1 %617 }
  0xeb   : > { %v590_v7 = vmax.f32 %v573_v3, 0.0  ;;  %v623_v14 = vpop.permute.xlu2 %622 }
  0xed   : > { %v598_v10 = vpack.c.bf16 %v590_v7, %v589_v6  ;;  %v633_v7 = vpop.permute.xlu0 %632 }
  0xef   : > { %679 = vmatpush.bf16.msra.mxu1 %v598_v10  ;;  %942 = vmatpush.bf16.msra.mxu2 %v598_v10 }
  0xf1   : > { %v732_v30 = vpop.permute.xlu1 %731 }
  0xf3   : > { %680 = vmatpush.bf16.msra.mxu1 %v597_v15  ;;  %943 = vmatpush.bf16.msra.mxu2 %v597_v15 }
  0xf5   : > { %v727_v26 = vpop.permute.xlu0 %726 }
  0xf7   : > { %681 = vmatpush.bf16.msra.mxu1 %v596_v25  ;;  %944 = vmatpush.bf16.msra.mxu2 %v596_v25  ;;  %v939_v25 = vld [vmem:[%s1341_s5] sm:$0xff] }
  0xfb   : > { %682 = vmatpush.bf16.msra.mxu1 %v595_v27  ;;  %945 = vmatpush.bf16.msra.mxu2 %v595_v27 }
  0xff   : > { %683 = vmatpush.bf16.msra.mxu1 %v594_v38  ;;  %946 = vmatpush.bf16.msra.mxu2 %v594_v38 }
 0x103   : > { %684 = vmatpush.bf16.msra.mxu1 %v593_v47  ;;  %947 = vmatpush.bf16.msra.mxu2 %v593_v47 }
 0x107   : > { %685 = vmatpush.bf16.msra.mxu1 %v592_v50  ;;  %948 = vmatpush.bf16.msra.mxu2 %v592_v50 }
 0x10b   : > { %686 = vmatpush.bf16.msra.mxu1 %v591_v48  ;;  %949 = vmatpush.bf16.msra.mxu2 %v591_v48 }
 0x10e   : > { %687 = vmatmul.bf16.vlgmr.msra.gmra.mxu1 %v935_v51  ;;  %702 = vmatmul.bf16.vlgmr.msra.gmra.mxu2 %v938_v41 }
 0x11e   : > { %692 = vmatmul.bf16.gmra.mxu1 %v936_v43 }
 0x12e   : > { %697 = vmatmul.bf16.gmra.mxu1 %v937_v52 }
 0x18b   : > { %v688_v53 = vpop.f32.mrf.mxu1 }
 0x18c   : > { %v689_v19 = vadd.f32 %v688_v53, %v618_v18 }
 0x18e   : > { %v708_v23 = vmax.f32 %v689_v19, 0.0 }
 0x191   : > { %v703_v54 = vpop.f32.mrf.mxu2 }
 0x192   : > { %v704_v57 = vadd.f32 %v703_v54, %v648_v56 }
 0x193   : > { %v690_v55 = vpop.f32.mrf.mxu1 }
 0x194   : > { %v714_v62 = vmax.f32 %v704_v57, 0.0  ;;  %v691_v15 = vadd.f32 %v690_v55, %v623_v14 }
 0x196   : > { %v709_v21 = vmax.f32 %v691_v15, 0.0 }
 0x198   : > { %v716_v24 = vpack.c.bf16 %v709_v21, %v708_v23 }
 0x199   : > { %v705_v59 = vpop.f32.mrf.mxu2 }
 0x19a   : > { %v706_v60 = vadd.f32 %v705_v59, %v653_v58 }
 0x19b   : > { %v693_v61 = vpop.f32.mrf.mxu1 }
 0x19c   : > { %v715_v63 = vmax.f32 %v706_v60, 0.0  ;;  %v694_v11 = vadd.f32 %v693_v61, %v628_v4 }
 0x19e   : > { %v719_v0 = vpack.c.bf16 %v715_v63, %v714_v62  ;;  %v710_v20 = vmax.f32 %v694_v11, 0.0 }
 0x1a0   : > { %747 = vmatpush.bf16.msrb.mxu2 %v719_v0 }
 0x1a3   : > { %v695_v1 = vpop.f32.mrf.mxu1 }
 0x1a4   : > { %v696_v9 = vadd.f32 %v695_v1, %v633_v7 }
 0x1a6   : > { %v711_v16 = vmax.f32 %v696_v9, 0.0 }
 0x1a8   : > { %v717_v22 = vpack.c.bf16 %v711_v16, %v710_v20 }
 0x1ab   : > { %v698_v3 = vpop.f32.mrf.mxu1 }
 0x1ac   : > { %v699_v6 = vadd.f32 %v698_v3, %v638_v2 }
 0x1ae   : > { %v712_v12 = vmax.f32 %v699_v6, 0.0 }
 0x1b3   : > { %v700_v8 = vpop.f32.mrf.mxu1 }
 0x1b4   : > { %v701_v10 = vadd.f32 %v700_v8, %v643_v5 }
 0x1b6   : > { %v713_v13 = vmax.f32 %v701_v10, 0.0 }
 0x1b8   : > { %v718_v17 = vpack.c.bf16 %v713_v13, %v712_v12 }
 0x1ba   : > { %748 = vmatpush.bf16.msrb.mxu2 %v718_v17 }
 0x1be   : > { %749 = vmatpush.bf16.msrb.mxu2 %v717_v22 }
 0x1c2   : > { %750 = vmatpush.bf16.msrb.mxu2 %v716_v24 }
 0x1c5   : > { %920 = vmatmul.msk.bf16.vlgmr.msrb.gmra.mxu2 %vm739_vm1, %v939_v25 }
 0x248   : > { %v752_v27 = vpop.f32.mrf.mxu2 }
 0x249   : > { %v753_v28 = vadd.f32 %v752_v27, %v727_v26 }
 0x24b   : > { %v757_v29 = vmax.f32 %v753_v28, 0.0 }
 0x24d   : > { %759 = vst [vmem:[%s331_s19] sm:$0xff] %v757_v29 }
 0x250   : > { %v754_v31 = vpop.f32.mrf.mxu2 }
 0x251   : > { %v755_v32 = vadd.f32 %v754_v31, %v732_v30 }
 0x253   : > { %v758_v33 = vmax.f32 %v755_v32, 0.0 }
 0x255   : > { %760 = vst [vmem:[%s331_s19 + $0x8] sm:$0xff] %v758_v33 }
 0x256   : > { %1023 = shalt.err (!%p1020_p5)
}
 0x257   : > { %s1061_s22 = smov 128   ;;  %s1062_s16 = smov 256  }
 0x258   : > { %s1063_s17 = smov 8  }
 0x259   : > { %950 = dma.vmem_to_hbm [thread:$0]  (%p1142_p6), %s774_s20, 256, %s776_s21, %s762_s28, %s1061_s22, %s1062_s16, %s1063_s17  }
 0x25a PF: > { %s790_s18 = sand.u32 1, %s1046_s24   ;;  %p953_p7 = pnand %p846_p9, %p1146_p8 }
 0x25b   : > { %s791_s19 = scalar_lea.sflag [#allocation4], %s790_s18 }
 0x25c   : > { %p954_p10 = pneg %p953_p7 }
 0x25e   : > { %1041 = dma.done.wait (%p954_p10), %s791_s19, 256  }
 0x25f   : > { %1043 = vsyncadd (%p954_p10), %s791_s19, 4294967040  ;;  %p17_p11 = scmp.ge.s32.totalorder %s1127_s30, 4   ;;  %s1346_s24 = smov %s1050_s25 }
 0x260   : > { %s1347_s25 = smov %s1054_s26  ;;  %s1348_s26 = smov %s1140_s10 }
 0x261   : > { %s1349_s27 = smov %s1127_s30  ;;  %19 = sbr.rel (!%p17_p11) target bundleno = 3 (0x3), region = 129 }
 0x266   :  { %797 = vsyncpa [#allocation4], 1 }
 0x267   :  { %799 = vsyncpa [#allocation4 + $0x1], 1 }

</bundles_post_ra>
